<compile_context>
chip_gen: v6e
topology: v6e:2x2x1
jax: 0.10.0
libtpu: 0.0.40
codegen_flags: <defaults>
</compile_context>

<pallas_src>
import jax
import jax.numpy as jnp
from jax.experimental import pallas as pl
from jax.experimental.pallas import tpu as pltpu

EPS = 1e-5


# --------------------------- Pallas kernels ---------------------------------
def conv1x1_stats_kernel(x_ref, w_ref, stats_ref):
    """Pass 1: y = w @ x, accumulate per-channel sum / sum-of-squares.

    x_ref     : (Cin, tile_hw)   compute dtype (bf16 or f32)
    w_ref     : (Cout, Cin)      compute dtype
    stats_ref : (Cout, 2)        f32 resident accumulator (col 0 = sum, col 1 = sum sq)
    """
    j = pl.program_id(1)
    y = jnp.dot(w_ref[...], x_ref[...], preferred_element_type=jnp.float32)

    @pl.when(j == 0)
    def _():
        stats_ref[...] = jnp.zeros_like(stats_ref)

    # Split stores (no concatenate relayout): lane-axis reductions go to the XLU.
    stats_ref[:, 0:1] += jnp.sum(y, axis=1, keepdims=True)
    stats_ref[:, 1:2] += jnp.sum(y * y, axis=1, keepdims=True)


def conv1x1_affine_relu_kernel(x_ref, w_ref, s_ref, t_ref, o_ref):
    """Pass 2: o = max((w @ x) * s + t, 0) -- single fused FMA epilogue + ReLU.

    x_ref : (Cin, tile_hw)   w_ref : (Cout, Cin)
    s_ref : (Cout, 1) f32    t_ref : (Cout, 1) f32
    o_ref : (Cout, tile_hw)  f32
    """
    y = jnp.dot(w_ref[...], x_ref[...], preferred_element_type=jnp.float32)
    y = y * s_ref[...] + t_ref[...]
    o_ref[...] = jnp.maximum(y, 0.0).astype(o_ref.dtype)


# --------------------------- sizing helpers ----------------------------------
def _vmem_limit_bytes():
    """Generation-aware scoped-VMEM budget (v5e/v6e: 128 MiB phys, v7x: 64 MiB)."""
    try:
        cap = pltpu.get_tpu_info().vmem_capacity_bytes
    except Exception:
        cap = 64 * 1024 * 1024  # conservative (v7x-sized) fallback
    return int(min(100 * 1024 * 1024, cap * 3 // 4))


def _pick_tile_hw(cin, cout, in_elt_bytes, vmem_limit):
    """Largest 128-multiple spatial tile whose double-buffered x+out blocks fit ~60%
    of the scoped-VMEM budget (the constant w/s/t blocks are tiny)."""
    budget = int(vmem_limit * 0.6)
    per_col = 2 * (cin * in_elt_bytes + cout * 4)  # 2x: double-buffered; out is f32
    t = budget // max(per_col, 1)
    t = (t // 128) * 128
    return max(128, min(t, 8192))


# --------------------------- wrapper -----------------------------------------
def gating_signal(x_nchw, params, *, batchnorm=True, tile_hw=None,
                  compute_dtype=jnp.bfloat16):
    """Matches torch GatingSignal.forward (module in default .train() mode)."""
    w = params["w"]          # (Cout, Cin, 1, 1)  PyTorch OIHW layout
    b = params["b"]          # (Cout,)
    N, Cin, H, W = x_nchw.shape
    Cout = w.shape[0]
    HW = H * W
    M = N * HW               # true element count per channel for BN stats

    # NCHW stays put: only the contiguous trailing spatial dims are merged (free).
    x3 = x_nchw.reshape(N, Cin, HW).astype(compute_dtype)
    wt = w.reshape(Cout, Cin).astype(compute_dtype)

    vmem_limit = _vmem_limit_bytes()
    in_elt = jnp.dtype(compute_dtype).itemsize
    if tile_hw is None:
        tile_hw = _pick_tile_hw(Cin, Cout, in_elt, vmem_limit)
    if tile_hw >= HW:
        tile_hw = HW          # single full-extent block (any size allowed)
        HWp = HW
    else:
        HWp = pl.cdiv(HW, tile_hw) * tile_hw
    if HWp != HW:
        # Zero columns contribute nothing to the BN sums and are sliced off at the end.
        x3 = jnp.pad(x3, ((0, 0), (0, 0), (0, HWp - HW)))
    grid = (N, HWp // tile_hw)

    mm_flops = 2 * N * HWp * Cin * Cout
    x_bytes = N * Cin * HWp * in_elt
    w_bytes = Cout * Cin * in_elt

    if batchnorm:
        # ---- pass 1: per-channel batch statistics (resident accumulator per n) ----
        stats = pl.pallas_call(
            conv1x1_stats_kernel,
            out_shape=jax.ShapeDtypeStruct((N, Cout, 2), jnp.float32),
            grid_spec=pltpu.PrefetchScalarGridSpec(
                num_scalar_prefetch=0,
                grid=grid,
                in_specs=[
                    pl.BlockSpec((None, Cin, tile_hw), lambda n, j: (n, 0, j)),
                    pl.BlockSpec((Cout, Cin), lambda n, j: (0, 0)),
                ],
                out_specs=pl.BlockSpec((None, Cout, 2), lambda n, j: (n, 0, 0)),
            ),
            compiler_params=pltpu.CompilerParams(
                dimension_semantics=("parallel", "arbitrary"),
                vmem_limit_bytes=vmem_limit,
            ),
            cost_estimate=pl.CostEstimate(
                flops=mm_flops + 3 * N * HWp * Cout,
                transcendentals=0,
                bytes_accessed=x_bytes + w_bytes + N * Cout * 2 * 4,
            ),
        )(x3, wt)

        # Tiny per-channel glue: mean / biased var -> scale & shift.
        sums = jnp.sum(stats, axis=0)                 # (Cout, 2)
        mean = sums[:, 0] / M
        var = jnp.maximum(sums[:, 1] / M - mean * mean, 0.0)
        s = params["gamma"].astype(jnp.float32) * jax.lax.rsqrt(var + EPS)
        # Conv bias is cancelled exactly by the mean subtraction -> never computed.
        t = params["beta"].astype(jnp.float32) - mean * s
    else:
        # No BN: identity scale, conv bias folded into the shift.
        s = jnp.ones((Cout,), jnp.float32)
        t = b.astype(jnp.float32)

    # ---- pass 2: conv + fused affine + ReLU, fully parallel grid ----------------
    out = pl.pallas_call(
        conv1x1_affine_relu_kernel,
        out_shape=jax.ShapeDtypeStruct((N, Cout, HWp), jnp.float32),
        grid_spec=pltpu.PrefetchScalarGridSpec(
            num_scalar_prefetch=0,
            grid=grid,
            in_specs=[
                pl.BlockSpec((None, Cin, tile_hw), lambda n, j: (n, 0, j)),
                pl.BlockSpec((Cout, Cin), lambda n, j: (0, 0)),
                pl.BlockSpec((Cout, 1), lambda n, j: (0, 0)),
                pl.BlockSpec((Cout, 1), lambda n, j: (0, 0)),
            ],
            out_specs=pl.BlockSpec((None, Cout, tile_hw), lambda n, j: (n, 0, j)),
        ),
        compiler_params=pltpu.CompilerParams(
            dimension_semantics=("parallel", "parallel"),
            vmem_limit_bytes=vmem_limit,
        ),
        cost_estimate=pl.CostEstimate(
            flops=mm_flops + 3 * N * HWp * Cout,
            transcendentals=0,
            bytes_accessed=x_bytes + w_bytes + N * Cout * HWp * 4,
        ),
    )(x3, wt, s.reshape(Cout, 1), t.reshape(Cout, 1))

    # Trailing-dim slice + reshape only: no transpose, output is already NCHW.
    return out[:, :, :HW].reshape(N, Cout, H, W)


# --------------------------- pure-JAX reference ------------------------------
def _ref_gating_signal(x_nchw, params, batchnorm=True):
    y = jax.lax.conv_general_dilated(
        x_nchw, params["w"], window_strides=(1, 1), padding="VALID",
        dimension_numbers=("NCHW", "OIHW", "NCHW"))
    y = y + params["b"].reshape(1, -1, 1, 1)
    if batchnorm:
        mean = y.mean(axis=(0, 2, 3), keepdims=True)
        var = ((y - mean) ** 2).mean(axis=(0, 2, 3), keepdims=True)
        y = (y - mean) / jnp.sqrt(var + EPS)
        y = y * params["gamma"].reshape(1, -1, 1, 1) + params["beta"].reshape(1, -1, 1, 1)
    return jnp.maximum(y, 0.0)


if __name__ == "__main__":
    key = jax.random.PRNGKey(0)
    k = jax.random.split(key, 5)

    N, Cin, H, W = 2, 4, 16, 16
    Cout = 8

    x = jax.random.normal(k[0], (N, Cin, H, W), jnp.float32)
    params = {
        # Conv2d(Cin, Cout, kernel_size=1, bias=True) weights in PyTorch OIHW layout.
        "w": 0.1 * jax.random.normal(k[1], (Cout, Cin, 1, 1), jnp.float32),
        "b": 0.1 * jax.random.normal(k[2], (Cout,), jnp.float32),
        "gamma": 1.0 + 0.1 * jax.random.normal(k[3], (Cout,), jnp.float32),
        "beta": 0.1 * jax.random.normal(k[4], (Cout,), jnp.float32),
    }

    fn = jax.jit(gating_signal,
                 static_argnames=("batchnorm", "tile_hw", "compute_dtype"))

    ref = _ref_gating_signal(x, params, batchnorm=True)

    # Default bf16 MXU operands; tile_hw=128 forces a (2 batch x 2 spatial) grid so
    # the resident BN accumulator and the pipelined DMA path are both exercised.
    out_bf16 = jax.block_until_ready(fn(x, params, batchnorm=True, tile_hw=128))
    assert out_bf16.shape == (N, Cout, H, W)
    assert jnp.max(jnp.abs(out_bf16 - ref)) < 1e-1, \
        "mismatch vs JAX reference (batchnorm=True, bf16 operands)"

    # f32 operands: tight check against the pure-JAX f32 reference.
    out_f32 = jax.block_until_ready(
        fn(x, params, batchnorm=True, tile_hw=128, compute_dtype=jnp.float32))
    assert jnp.max(jnp.abs(out_f32 - ref)) < 1e-4, \
        "mismatch vs JAX reference (batchnorm=True, f32 operands)"

    # No-BN path (conv bias + ReLU) with auto tile selection.
    ref_nb = _ref_gating_signal(x, params, batchnorm=False)
    out_nb = jax.block_until_ready(
        fn(x, params, batchnorm=False, compute_dtype=jnp.float32))
    assert jnp.max(jnp.abs(out_nb - ref_nb)) < 1e-4, \
        "mismatch vs JAX reference (batchnorm=False)"

    print("KERNEL_OK")
</pallas_src>

<mosaic_0001>
module attributes {stable_mosaic.version = 11 : i64} {
  func.func @conv1x1_stats_kernel(%arg0: i32, %arg1: i32, %arg2: memref<1x4x128xbf16, #tpu.memory_space<vmem>>, %arg3: memref<8x4xbf16, #tpu.memory_space<vmem>>, %arg4: memref<1x8x2xf32, #tpu.memory_space<vmem>>) attributes {dimension_semantics = [#tpu.dimension_semantics<parallel>, #tpu.dimension_semantics<arbitrary>], iteration_bounds = array<i64: 2, 2>, scalar_prefetch = 0 : i64, scratch_operands = 0 : i64, tpu.core_type = #tpu.core_type<tc>, window_params = [{transform_indices = @transform_0, window_bounds = array<i64: 1, 4, 128>}, {pipeline_mode = #tpu.pipeline_mode<synchronous>, transform_indices = @transform_1, window_bounds = array<i64: 8, 4>}, {transform_indices = @transform_2, window_bounds = array<i64: 1, 8, 2>}]} {
    %c0 = arith.constant 0 : index
    %c0_0 = arith.constant 0 : index
    %0 = vector.load %arg3[%c0, %c0_0] : memref<8x4xbf16, #tpu.memory_space<vmem>>, vector<8x4xbf16>
    %c0_1 = arith.constant 0 : index
    %c0_2 = arith.constant 0 : index
    %c0_3 = arith.constant 0 : index
    %1 = vector.load %arg2[%c0_1, %c0_2, %c0_3] : memref<1x4x128xbf16, #tpu.memory_space<vmem>>, vector<1x4x128xbf16>
    %2 = vector.shape_cast %1 : vector<1x4x128xbf16> to vector<4x128xbf16>
    %cst = arith.constant dense<0.000000e+00> : vector<8x128xf32>
    %3 = tpu.matmul %0, %2, %cst {dimension_numbers = #tpu.dot_dimension_numbers<[1], [0], [0], [1], [0, 0, 1, 1], [], []>} : vector<8x4xbf16>, vector<4x128xbf16>, vector<8x128xf32> -> vector<8x128xf32>
    %c0_i32 = arith.constant 0 : i32
    %4 = arith.cmpi eq, %arg1, %c0_i32 : i32
    %5 = arith.extui %4 : i1 to i32
    %c0_i32_4 = arith.constant 0 : i32
    %6 = arith.cmpi ne, %5, %c0_i32_4 : i32
    scf.if %6 {
      %cst_18 = arith.constant 0.000000e+00 : f32
      %24 = vector.broadcast %cst_18 : f32 to vector<8x2xf32>
      %c0_19 = arith.constant 0 : index
      %c0_20 = arith.constant 0 : index
      %c0_21 = arith.constant 0 : index
      %25 = vector.load %arg4[%c0_19, %c0_20, %c0_21] : memref<1x8x2xf32, #tpu.memory_space<vmem>>, vector<1x8x2xf32>
      %26 = vector.shape_cast %25 : vector<1x8x2xf32> to vector<8x2xf32>
      %27 = vector.shape_cast %24 : vector<8x2xf32> to vector<1x8x2xf32>
      tpu.vector_store %arg4[%c0_19, %c0_20, %c0_21], %27 {strides = array<i32>} : memref<1x8x2xf32, #tpu.memory_space<vmem>>, vector<1x8x2xf32>,
    } else {
    }
    %c0_5 = arith.constant 0 : index
    %c0_6 = arith.constant 0 : index
    %c0_7 = arith.constant 0 : index
    %7 = vector.load %arg4[%c0_5, %c0_6, %c0_7] : memref<1x8x2xf32, #tpu.memory_space<vmem>>, vector<1x8x1xf32>
    %8 = vector.shape_cast %7 : vector<1x8x1xf32> to vector<8x1xf32>
    %cst_8 = arith.constant dense<0.000000e+00> : vector<8xf32>
    %9 = vector.multi_reduction <add>, %3, %cst_8 [1] : vector<8x128xf32> to vector<8xf32>
    %10 = vector.shape_cast %9 : vector<8xf32> to vector<8x1xf32>
    %11 = arith.addf %8, %10 : vector<8x1xf32>
    %c0_9 = arith.constant 0 : index
    %c0_10 = arith.constant 0 : index
    %c0_11 = arith.constant 0 : index
    %12 = vector.load %arg4[%c0_9, %c0_10, %c0_11] : memref<1x8x2xf32, #tpu.memory_space<vmem>>, vector<1x8x1xf32>
    %13 = vector.shape_cast %12 : vector<1x8x1xf32> to vector<8x1xf32>
    %14 = vector.shape_cast %11 : vector<8x1xf32> to vector<1x8x1xf32>
    tpu.vector_store %arg4[%c0_9, %c0_10, %c0_11], %14 {strides = array<i32>} : memref<1x8x2xf32, #tpu.memory_space<vmem>>, vector<1x8x1xf32>,
    %c0_12 = arith.constant 0 : index
    %c0_13 = arith.constant 0 : index
    %c1 = arith.constant 1 : index
    %15 = vector.load %arg4[%c0_12, %c0_13, %c1] : memref<1x8x2xf32, #tpu.memory_space<vmem>>, vector<1x8x1xf32>
    %16 = vector.shape_cast %15 : vector<1x8x1xf32> to vector<8x1xf32>
    %17 = arith.mulf %3, %3 : vector<8x128xf32>
    %cst_14 = arith.constant dense<0.000000e+00> : vector<8xf32>
    %18 = vector.multi_reduction <add>, %17, %cst_14 [1] : vector<8x128xf32> to vector<8xf32>
    %19 = vector.shape_cast %18 : vector<8xf32> to vector<8x1xf32>
    %20 = arith.addf %16, %19 : vector<8x1xf32>
    %c0_15 = arith.constant 0 : index
    %c0_16 = arith.constant 0 : index
    %c1_17 = arith.constant 1 : index
    %21 = vector.load %arg4[%c0_15, %c0_16, %c1_17] : memref<1x8x2xf32, #tpu.memory_space<vmem>>, vector<1x8x1xf32>
    %22 = vector.shape_cast %21 : vector<1x8x1xf32> to vector<8x1xf32>
    %23 = vector.shape_cast %20 : vector<8x1xf32> to vector<1x8x1xf32>
    tpu.vector_store %arg4[%c0_15, %c0_16, %c1_17], %23 {strides = array<i32>} : memref<1x8x2xf32, #tpu.memory_space<vmem>>, vector<1x8x1xf32>,
    return
  }
  func.func @transform_0(%arg0: i32, %arg1: i32) -> (i32, i32, i32) {
    %c0_i32 = arith.constant 0 : i32
    %c0_i32_0 = arith.constant 0 : i32
    return %arg0, %c0_i32, %arg1 : i32, i32, i32
  }
  func.func @transform_1(%arg0: i32, %arg1: i32) -> (i32, i32) {
    %c0_i32 = arith.constant 0 : i32
    %c0_i32_0 = arith.constant 0 : i32
    %c0_i32_1 = arith.constant 0 : i32
    return %c0_i32, %c0_i32_0 : i32, i32
  }
  func.func @transform_2(%arg0: i32, %arg1: i32) -> (i32, i32, i32) {
    %c0_i32 = arith.constant 0 : i32
    %c0_i32_0 = arith.constant 0 : i32
    %c0_i32_1 = arith.constant 0 : i32
    return %arg0, %c0_i32, %c0_i32_0 : i32, i32, i32
  }
}

module attributes {stable_mosaic.version = 11 : i64} {
  func.func @conv1x1_affine_relu_kernel(%arg0: i32, %arg1: i32, %arg2: memref<1x4x128xbf16, #tpu.memory_space<vmem>>, %arg3: memref<8x4xbf16, #tpu.memory_space<vmem>>, %arg4: memref<8x1xf32, #tpu.memory_space<vmem>>, %arg5: memref<8x1xf32, #tpu.memory_space<vmem>>, %arg6: memref<1x8x128xf32, #tpu.memory_space<vmem>>) attributes {dimension_semantics = [#tpu.dimension_semantics<parallel>, #tpu.dimension_semantics<parallel>], iteration_bounds = array<i64: 2, 2>, scalar_prefetch = 0 : i64, scratch_operands = 0 : i64, tpu.core_type = #tpu.core_type<tc>, window_params = [{transform_indices = @transform_0, window_bounds = array<i64: 1, 4, 128>}, {pipeline_mode = #tpu.pipeline_mode<synchronous>, transform_indices = @transform_1, window_bounds = array<i64: 8, 4>}, {pipeline_mode = #tpu.pipeline_mode<synchronous>, transform_indices = @transform_2, window_bounds = array<i64: 8, 1>}, {pipeline_mode = #tpu.pipeline_mode<synchronous>, transform_indices = @transform_3, window_bounds = array<i64: 8, 1>}, {transform_indices = @transform_4, window_bounds = array<i64: 1, 8, 128>}]} {
    %c0 = arith.constant 0 : index
    %c0_0 = arith.constant 0 : index
    %0 = vector.load %arg3[%c0, %c0_0] : memref<8x4xbf16, #tpu.memory_space<vmem>>, vector<8x4xbf16>
    %c0_1 = arith.constant 0 : index
    %c0_2 = arith.constant 0 : index
    %c0_3 = arith.constant 0 : index
    %1 = vector.load %arg2[%c0_1, %c0_2, %c0_3] : memref<1x4x128xbf16, #tpu.memory_space<vmem>>, vector<1x4x128xbf16>
    %2 = vector.shape_cast %1 : vector<1x4x128xbf16> to vector<4x128xbf16>
    %cst = arith.constant dense<0.000000e+00> : vector<8x128xf32>
    %3 = tpu.matmul %0, %2, %cst {dimension_numbers = #tpu.dot_dimension_numbers<[1], [0], [0], [1], [0, 0, 1, 1], [], []>} : vector<8x4xbf16>, vector<4x128xbf16>, vector<8x128xf32> -> vector<8x128xf32>
    %c0_4 = arith.constant 0 : index
    %c0_5 = arith.constant 0 : index
    %4 = vector.load %arg4[%c0_4, %c0_5] : memref<8x1xf32, #tpu.memory_space<vmem>>, vector<8x1xf32>
    %5 = vector.broadcast %4 : vector<8x1xf32> to vector<8x128xf32>
    %6 = arith.mulf %3, %5 : vector<8x128xf32>
    %c0_6 = arith.constant 0 : index
    %c0_7 = arith.constant 0 : index
    %7 = vector.load %arg5[%c0_6, %c0_7] : memref<8x1xf32, #tpu.memory_space<vmem>>, vector<8x1xf32>
    %8 = vector.broadcast %7 : vector<8x1xf32> to vector<8x128xf32>
    %9 = arith.addf %6, %8 : vector<8x128xf32>
    %cst_8 = arith.constant 0.000000e+00 : f32
    %10 = vector.broadcast %cst_8 : f32 to vector<8x128xf32>
    %11 = arith.maximumf %9, %10 : vector<8x128xf32>
    %c0_9 = arith.constant 0 : index
    %c0_10 = arith.constant 0 : index
    %c0_11 = arith.constant 0 : index
    %12 = vector.load %arg6[%c0_9, %c0_10, %c0_11] : memref<1x8x128xf32, #tpu.memory_space<vmem>>, vector<1x8x128xf32>
    %13 = vector.shape_cast %12 : vector<1x8x128xf32> to vector<8x128xf32>
    %14 = vector.shape_cast %11 : vector<8x128xf32> to vector<1x8x128xf32>
    tpu.vector_store %arg6[%c0_9, %c0_10, %c0_11], %14 {strides = array<i32>} : memref<1x8x128xf32, #tpu.memory_space<vmem>>, vector<1x8x128xf32>,
    return
  }
  func.func @transform_0(%arg0: i32, %arg1: i32) -> (i32, i32, i32) {
    %c0_i32 = arith.constant 0 : i32
    %c0_i32_0 = arith.constant 0 : i32
    return %arg0, %c0_i32, %arg1 : i32, i32, i32
  }
  func.func @transform_1(%arg0: i32, %arg1: i32) -> (i32, i32) {
    %c0_i32 = arith.constant 0 : i32
    %c0_i32_0 = arith.constant 0 : i32
    %c0_i32_1 = arith.constant 0 : i32
    return %c0_i32, %c0_i32_0 : i32, i32
  }
  func.func @transform_2(%arg0: i32, %arg1: i32) -> (i32, i32) {
    %c0_i32 = arith.constant 0 : i32
    %c0_i32_0 = arith.constant 0 : i32
    %c0_i32_1 = arith.constant 0 : i32
    return %c0_i32, %c0_i32_0 : i32, i32
  }
  func.func @transform_3(%arg0: i32, %arg1: i32) -> (i32, i32) {
    %c0_i32 = arith.constant 0 : i32
    %c0_i32_0 = arith.constant 0 : i32
    %c0_i32_1 = arith.constant 0 : i32
    return %c0_i32, %c0_i32_0 : i32, i32
  }
  func.func @transform_4(%arg0: i32, %arg1: i32) -> (i32, i32, i32) {
    %c0_i32 = arith.constant 0 : i32
    %c0_i32_0 = arith.constant 0 : i32
    return %arg0, %c0_i32, %arg1 : i32, i32, i32
  }
}

</mosaic_0001>

<bundles_post_ra>
// kernel: gating_signal.3
= control target key start
LH: loop header
LB: loop body
LE: loop exit
PB: predicated region body
PF: predicated region fallthrough
CT: control target
= control target key end

     0   :  { %s514_s15 = smov 0   ;;  %s516_s16 = smov 0   ;;  %s574_s0 = inlined_call_operand.vmem [shape: bf16[2,4,256], index: 0, kind: input, shape index: {}]   ;;  %s575_s1 = inlined_call_operand.vmem [shape: bf16[8,4], index: 1, kind: input, shape index: {}]   ;;  %s576_s2 = inlined_call_operand.vmem [shape: f32[8,1], index: 2, kind: input, shape index: {}]   ;;  %s577_s3 = inlined_call_operand.vmem [shape: f32[8,1], index: 3, kind: input, shape index: {}]   ;;  %s578_s4 = inlined_call_operand.vmem [shape: f32[2,8,256], index: 4, kind: output, shape index: {}]  }
   0x1   :  { %s518_s17 = smov 0   ;;  %s520_s18 = smov 0  }
   0x2   :  { %s522_s19 = smov 0  }
   0x3 LB: > { %s23_s20 = sadd.s32 1, %s476_s17  ;;  %s26_s21 = sadd.s32 1, %s480_s18  ;;  %s484_s19 = sphi %s522_s19, %s14_s19   ;;  %s480_s18 = sphi %s520_s18, %s582_s18   ;;  %s476_s17 = sphi %s518_s17, %s581_s17   ;;  %s472_s16 = sphi %s516_s16, %s580_s16   ;;  %s468_s15 = sphi %s514_s15, %s579_s15  }
   0x4   : > { %p24_p0 = scmp.ge.s32.totalorder %s23_s20, 2  ;;  %p386_p1 = scmp.ge.s32.totalorder %s484_s19, 1 }
   0x5   : > { %p181_p2 = scmp.lt.s32.totalorder %s484_s19, 5 }
   0x6   : > { %s584_s20 = smov (%p24_p0, %s23_s20), 0  ;;  %s586_s21 = smov (!%p24_p0, %s26_s21), %s480_s18 }
   0x7   : > { %p182_p3 = pnand %p386_p1, %p181_p2  ;;  %p28_p4 = scmp.ge.s32.totalorder %s586_s21, 2 }
   0x8   : > { %p213_p5 = scmp.lt.s32.totalorder (!%p182_p3), %s472_s16, 1  ;;  %p215_p6 = scmp.lt.s32.totalorder (!%p182_p3), %s468_s15, 1 }
   0x9   : > { %s588_s21 = smov (%p28_p4, %s586_s21), 0  ;;  %185 = sbr.rel (%p182_p3) target bundleno = 224 (0xe0), region = 36 }
   0xe   : > { %v486_v0 = vmov 0.0   ;;  %vm487_vm0 = vmmov 0   ;;  %v280_v1 = vld [vmem:[%s576_s2] sm:$0xff]  ;;  %s590_s16 = smov (!%p213_p5, %s472_s16), 1  ;;  %v488_v2 = vmov 0   ;;  %s592_s15 = smov (!%p215_p6, %s468_s15), 1 }
   0xf   : > { %396 = vmatprep.subr.bf16.mxu0 %v486_v0  ;;  %398 = vmatprep.mubr.msk.bf16.mxu0 %vm487_vm0, %v486_v0  ;;  %s387_s24 = sshll.u32 %s590_s16, 1  ;;  %v287_v3 = vld [vmem:[%s577_s3] sm:$0xff]  ;;  %vm236_vm1 = vcmask 1041408   ;;  %vm232_vm2 = vcmask 31744  }
  0x10   : > { %445 = vset.pattern.permute.xlu0 %v488_v2  ;;  %s218_s27 = sadd.s32 %s387_s24, %s592_s15  ;;  %v230_v6 = vld [vmem:[%s575_s1] sm:$0xf] }
  0x11   : > { %283 = vperm.xlu0 %445, %v280_v1   ;;  %s388_s28 = sshll.u32 %s218_s27, 1  ;;  %s390_s8 = sshll.u32 %s218_s27, 3 }
  0x12   : > { %s220_s5 = scalar_lea.vmem %s574_s0, %s388_s28  ;;  %s228_s11 = scalar_lea.vmem %s578_s4, %s390_s8 }
  0x13   : > { %v231_v4 = vld [vmem:[%s220_s5] sm:$0x3] }
  0x14   : > { %v238_v5 = vsel %vm236_vm1, %v231_v4, 0 }
  0x15   : > { %290 = vperm.xlu0 %445, %v287_v3   ;;  %397 = vmatpush3.bf16.msra.mxu0 %v238_v5 }
  0x18   : > { %399 = vmatmul.mubr.msk.bf16.vlgmr.msra.gmra.mxu0 %vm232_vm2, %v230_v6 }
  0x8c   : > { %v284_v7 = vpop.permute.xlu0 %283 }
  0x90   : > { %v291_v10 = vpop.permute.xlu0 %290 }
  0xd8   : > { %v274_v8 = vpop.f32.mrf.mxu0 }
  0xd9   : > { %v286_v9 = vmul.f32 %v284_v7, %v274_v8 }
  0xda   : > { %v400_v11 = vpop.f32.mrf.mxu0 }
  0xdb   : > { %v293_v12 = vadd.f32 %v291_v10, %v286_v9 }
  0xdc   : > { %v277_v13 = vpop.f32.mrf.mxu0 }
  0xdd   : > { %v294_v14 = vmax.f32 %v293_v12, 0.0 }
  0xde   : > { %v401_v15 = vpop.f32.mrf.mxu0 }
  0xdf   : > { %295 = vst [vmem:[%s228_s11] sm:$0xff] %v294_v14 }
  0xe0 PF: > { %s14_s19 = sadd.s32 1, %s484_s19   ;;  %s579_s15 = smov %s476_s17 }
  0xe1   : > { %p11_p7 = scmp.ge.s32.totalorder %s14_s19, 6   ;;  %s580_s16 = smov %s480_s18 }
  0xe2   : > { %s581_s17 = smov %s584_s20  ;;  %s582_s18 = smov %s588_s21 }
  0xe3   :  { %13 = sbr.rel (!%p11_p7) target bundleno = 3 (0x3), region = 66 }

// kernel: gating_signal.2
= control target key start
LH: loop header
LB: loop body
LE: loop exit
PB: predicated region body
PF: predicated region fallthrough
CT: control target
= control target key end

     0   :  { %s426_s9 = smov 0   ;;  %s428_s10 = smov 0   ;;  %s492_s0 = inlined_call_operand.vmem [shape: bf16[2,4,256], index: 0, kind: input, shape index: {}]   ;;  %s493_s1 = inlined_call_operand.vmem [shape: bf16[8,4], index: 1, kind: input, shape index: {}]   ;;  %s494_s2 = inlined_call_operand.vmem [shape: f32[2,8,2], index: 2, kind: output, shape index: {}]  }
   0x1   :  { %s430_s11 = smov 0   ;;  %s432_s12 = smov 0  }
   0x2   :  { %s434_s13 = smov 0  }
   0x3 LB: > { %s21_s14 = sadd.s32 1, %s398_s11  ;;  %s24_s15 = sadd.s32 1, %s402_s12  ;;  %s406_s13 = sphi %s434_s13, %s12_s13   ;;  %s402_s12 = sphi %s432_s12, %s498_s12   ;;  %s398_s11 = sphi %s430_s11, %s497_s11   ;;  %s394_s10 = sphi %s428_s10, %s496_s10   ;;  %s390_s9 = sphi %s426_s9, %s495_s9  }
   0x4   : > { %p22_p0 = scmp.ge.s32.totalorder %s21_s14, 2  ;;  %p309_p1 = scmp.ge.s32.totalorder %s406_s13, 1 }
   0x5   : > { %p129_p2 = scmp.lt.s32.totalorder %s406_s13, 5 }
   0x6   : > { %s500_s14 = smov (%p22_p0, %s21_s14), 0  ;;  %s502_s15 = smov (!%p22_p0, %s24_s15), %s402_s12 }
   0x7   : > { %p130_p3 = pnand %p309_p1, %p129_p2  ;;  %p26_p4 = scmp.ge.s32.totalorder %s502_s15, 2 }
   0x8   : > { %p153_p5 = scmp.lt.s32.totalorder (!%p130_p3), %s394_s10, 1  ;;  %p155_p6 = scmp.lt.s32.totalorder (!%p130_p3), %s390_s9, 1 }
   0x9   : > { %s504_s15 = smov (%p26_p4, %s502_s15), 0  ;;  %133 = sbr.rel (%p130_p3) target bundleno = 377 (0x179), region = 28 }
   0xa   : > { %p314_p7 = scmp.ne.s32.totalorder (!%p130_p3), %s390_s9, 0 }
   0xe   : > { %v408_v0 = vmov 0.0   ;;  %vm409_vm0 = vmmov 0   ;;  %s506_s10 = smov (!%p153_p5, %s394_s10), 1  ;;  %vm172_vm1 = vcmask 1041408   ;;  %v166_v3 = vld [vmem:[%s493_s1] sm:$0xf] }
   0xf   : > { %319 = vmatprep.subr.bf16.mxu0 %v408_v0  ;;  %321 = vmatprep.mubr.msk.bf16.mxu0 %vm409_vm0, %v408_v0  ;;  %s156_s16 = scalar_select %p155_p6, %s390_s9, 1  ;;  %vm168_vm2 = vcmask 31744  }
  0x10   : > { %s310_s17 = sshll.u32 %s506_s10, 1  ;;  %s312_s18 = sshll.u32 %s506_s10, 3 }
  0x11   : > { %s158_s19 = sadd.s32 %s310_s17, %s156_s16  ;;  %s463_s22 = scalar_lea.vmem %s494_s2, %s312_s18 }
  0x12   : > { %s311_s23 = sshll.u32 %s158_s19, 1 }
  0x13   : > { %s160_s26 = scalar_lea.vmem %s492_s0, %s311_s23 }
  0x14   : > { %v167_v1 = vld [vmem:[%s160_s26] sm:$0x3] }
  0x15   : > { %v174_v2 = vsel %vm172_vm1, %v167_v1, 0 }
  0x16   : > { %320 = vmatpush3.bf16.msra.mxu0 %v174_v2 }
  0x19   : > { %322 = vmatmul.mubr.msk.bf16.vlgmr.msra.gmra.mxu0 %vm168_vm2, %v166_v3 }
  0xd9   : > { %v210_v4 = vpop.f32.mrf.mxu0 }
  0xdb   : > { %v323_v5 = vpop.f32.mrf.mxu0  ;;  %219 = sbr.rel (%p314_p7) target bundleno = 226 (0xe2), region = 32 }
  0xdd   : > { %v213_v6 = vpop.f32.mrf.mxu0 }
  0xdf   : > { %v324_v7 = vpop.f32.mrf.mxu0 }
  0xe0   : > { %vm220_vm3 = vcmask 15360   ;;  %v410_v8 = vmov 0.0  }
  0xe1   : > { %221 = vst.msk [vmem:[%s463_s22] sm:$0xff] %vm220_vm3, %v410_v8 }
  0xe2 PF: > { %223 = vadd.xlane.f32.xlu0 %v210_v4  ;;  %v229_v9 = vmul.f32 %v210_v4, %v210_v4  ;;  %vm226_vm4 = vcmask 7168   ;;  %vm233_vm5 = vcmask 15368  }
  0xe6   : > { %230 = vadd.xlane.f32.xlu0 %v229_v9 }
  0xe8   : > { %v222_v10 = vld [vmem:[%s463_s22] sm:$0xff] }
 0x16b   : > { %v224_v11 = vpop.xlane.xlu0 %223 }
 0x16c   : > { %v225_v12 = vadd.f32 %v224_v11, %v222_v10 }
 0x16e   : > { %227 = vst.msk [vmem:[%s463_s22] sm:$0xff] %vm226_vm4, %v225_v12 }
 0x16f   : > { %v231_v13 = vpop.xlane.xlu0 %230 }
 0x175   : > { %v228_v14 = vld [vmem:[%s463_s22] sm:$0xff] }
 0x176   : > { %v232_v15 = vadd.f32 %v231_v13, %v228_v14 }
 0x178   : > { %234 = vst.msk [vmem:[%s463_s22] sm:$0xff] %vm233_vm5, %v232_v15 }
 0x179 PF: > { %s12_s13 = sadd.s32 1, %s406_s13   ;;  %s495_s9 = smov %s398_s11 }
 0x17a   : > { %p9_p8 = scmp.ge.s32.totalorder %s12_s13, 6   ;;  %s496_s10 = smov %s402_s12 }
 0x17b   : > { %s497_s11 = smov %s500_s14  ;;  %s498_s12 = smov %s504_s15 }
 0x17c   :  { %11 = sbr.rel (!%p9_p8) target bundleno = 3 (0x3), region = 62 }

</bundles_post_ra>
